<compile_context>
chip_gen: v5e
topology: v5e:2x2
jax: 0.10.0
libtpu: 0.0.40
codegen_flags: <defaults>
</compile_context>

<pallas_src>
import jax
import jax.numpy as jnp
import numpy as np
from jax.experimental import pallas as pl
from jax.experimental.pallas import tpu as pltpu


# ------------------------------ Pallas wrapper ------------------------------ #
def stlstm_classifier_pallas(batch_l, batch_s, batch_q, params):
    """batch_l/s/q: (B, T, I) float32 -> logits (B, O) float32."""
    B, T, I = batch_l.shape
    H = params["w_hh"].shape[1]
    O = params["w_lin"].shape[0]
    G = 4 * H
    O_pad = 128 * pl.cdiv(O, 128)          # lane-dense output slab

    # Fused input-projection weight: rows [W_ih; W_s; W_q] -> (3I, 4H), so one
    # batched matmul covers all three input streams for all timesteps.
    w_xsq = jnp.concatenate(
        [params["w_ih"].T, params["w_s"].T, params["w_q"].T], axis=0
    ).astype(jnp.float32)                                     # (3I, 4H)
    w_hh_T = params["w_hh"].T.astype(jnp.float32)             # (H, 4H)
    b = (params["b_ih"] + params["b_hh"]).reshape(1, G).astype(jnp.float32)

    # Lane-dense (padded to 128) linear head; padded columns are zero.
    w_lin_T = jnp.zeros((H, O_pad), jnp.float32).at[:, :O].set(
        params["w_lin"].T.astype(jnp.float32))                # (H, O_pad)
    b_lin = jnp.zeros((1, O_pad), jnp.float32).at[:, :O].set(
        params["b_lin"].reshape(1, O).astype(jnp.float32))    # (1, O_pad)

    # Concatenate the three streams on the feature axis and flatten to
    # sequence-major rows: row index = t*B + b  -> preact rows for a timestep
    # are contiguous.
    xsq = jnp.concatenate([batch_l, batch_s, batch_q], axis=-1)       # (B, T, 3I)
    xsq = jnp.transpose(xsq, (1, 0, 2)).reshape(T * B, 3 * I)         # (T*B, 3I)

    def kernel(xsq_ref, w_xsq_ref, b_ref, w_hh_ref, w_lin_ref, b_lin_ref,
               out_ref):
        # Hoisted input projection for ALL timesteps: one MXU op with T*B rows
        # (fills sublanes far better than per-step B rows).
        preact = (jnp.dot(xsq_ref[...], w_xsq_ref[...],
                          preferred_element_type=jnp.float32)
                  + b_ref[...])                               # (T*B, 4H)

        w_hh = w_hh_ref[...]                                  # (H, 4H)

        # Fully-unrolled recurrence (T is small & static): per step only one
        # (B, H) @ (H, 4H) MXU op + gate elementwise math.
        # TODO(synk): for large T, switch to a VMEM scratch holding `preact`
        # plus lax.fori_loop + pl.ds to bound live ranges.
        h = jnp.zeros((B, H), jnp.float32)
        c = jnp.zeros((B, H), jnp.float32)
        for t in range(T):
            gates = preact[t * B:(t + 1) * B, :] + jnp.dot(
                h, w_hh, preferred_element_type=jnp.float32)  # (B, 4H)
            i_g = jax.nn.sigmoid(gates[:, 0 * H:1 * H])
            f_g = jax.nn.sigmoid(gates[:, 1 * H:2 * H])
            g_g = jnp.tanh(gates[:, 2 * H:3 * H])
            o_g = jax.nn.sigmoid(gates[:, 3 * H:4 * H])
            c = f_g * c + i_g * g_g
            h = o_g * jnp.tanh(c)

        # Fused, lane-dense linear head on the last hidden state.
        out_ref[...] = (jnp.dot(h, w_lin_ref[...],
                                preferred_element_type=jnp.float32)
                        + b_lin_ref[...])

    def full(shape):
        return pl.BlockSpec(shape, lambda i, _s=shape: (0,) * len(_s))

    out_padded = pl.pallas_call(
        kernel,
        out_shape=jax.ShapeDtypeStruct((B, O_pad), jnp.float32),
        grid_spec=pltpu.PrefetchScalarGridSpec(
            num_scalar_prefetch=0,
            grid=(1,),
            in_specs=[full((T * B, 3 * I)),
                      full((3 * I, G)),
                      full((1, G)),
                      full((H, G)),
                      full((H, O_pad)),
                      full((1, O_pad))],
            out_specs=full((B, O_pad))),
        compiler_params=pltpu.CompilerParams(
            dimension_semantics=("arbitrary",)),
    )(xsq, w_xsq, b, w_hh_T, w_lin_T, b_lin)

    return out_padded[:, :O]


# ------------------------- JAX glue (non hot-path) -------------------------- #
def cal_slot_distance_batch_jax(values, slots):
    """JAX port of cal_slot_distance_batch (bisect == searchsorted right)."""
    n = slots.shape[0]
    hb = jnp.searchsorted(slots, values, side="right")
    lb = hb - 1
    at_end = hb == n
    lb_safe = jnp.clip(lb, 0, n - 1)
    hb_safe = jnp.clip(hb, 0, n - 1)
    lower = slots[lb_safe]
    higher = slots[hb_safe]
    total = higher - lower
    ld = jnp.where(at_end, 1.0, (values - lower) / jnp.where(total == 0, 1.0, total))
    hd = jnp.where(at_end, 0.0, (higher - values) / jnp.where(total == 0, 1.0, total))
    h_idx = jnp.where(at_end, lb_safe, hb_safe)
    return ld.astype(jnp.float32), hd.astype(jnp.float32), lb_safe, h_idx


def cal_inter(ld, hd, l_idx, h_idx, embed_w):
    l_e = embed_w[l_idx]    # (B, T, I)
    h_e = embed_w[h_idx]    # (B, T, I)
    return hd[..., None] * l_e + ld[..., None] * h_e


# ----------------------------- pure-JAX reference --------------------------- #
def stlstm_classifier_ref(batch_l, batch_s, batch_q, params):
    B, T, I = batch_l.shape
    H = params["w_hh"].shape[1]

    def step(carry, inp):
        h, c = carry
        x, s, q = inp
        gates = (x @ params["w_ih"].T + s @ params["w_s"].T + q @ params["w_q"].T
                 + h @ params["w_hh"].T + params["b_ih"] + params["b_hh"])
        i_g, f_g, g_g, o_g = jnp.split(gates, 4, axis=1)
        i_g = jax.nn.sigmoid(i_g)
        f_g = jax.nn.sigmoid(f_g)
        g_g = jnp.tanh(g_g)
        o_g = jax.nn.sigmoid(o_g)
        c_new = f_g * c + i_g * g_g
        h_new = o_g * jnp.tanh(c_new)
        return (h_new, c_new), h_new

    init = (jnp.zeros((B, H), jnp.float32), jnp.zeros((B, H), jnp.float32))
    xs = (jnp.transpose(batch_l, (1, 0, 2)),
          jnp.transpose(batch_s, (1, 0, 2)),
          jnp.transpose(batch_q, (1, 0, 2)))
    (h_last, _), _ = jax.lax.scan(step, init, xs)
    return h_last @ params["w_lin"].T + params["b_lin"]


# ------------------------------------ main ---------------------------------- #
if __name__ == "__main__":
    B, T, I, H, O = 2, 8, 16, 32, 10

    temporal_slots = jnp.array([0.0, 1.0, 2.0, 4.0, 8.0, 16.0], dtype=jnp.float32)
    spatial_slots = jnp.array([0.0, 0.5, 1.0, 2.0, 5.0, 10.0], dtype=jnp.float32)

    key = jax.random.PRNGKey(0)
    ks = jax.random.split(key, 12)
    k_w = 1.0 / np.sqrt(H)

    params = {
        "w_ih": jax.random.uniform(ks[0], (4 * H, I), jnp.float32, -k_w, k_w),
        "w_hh": jax.random.uniform(ks[1], (4 * H, H), jnp.float32, -k_w, k_w),
        "w_s": jax.random.uniform(ks[2], (4 * H, I), jnp.float32, -k_w, k_w),
        "w_q": jax.random.uniform(ks[3], (4 * H, I), jnp.float32, -k_w, k_w),
        "b_ih": jax.random.uniform(ks[4], (4 * H,), jnp.float32, -k_w, k_w),
        "b_hh": jax.random.uniform(ks[5], (4 * H,), jnp.float32, -k_w, k_w),
        "w_lin": jax.random.uniform(ks[6], (O, H), jnp.float32, -k_w, k_w),
        "b_lin": jax.random.uniform(ks[7], (O,), jnp.float32, -k_w, k_w),
        "embed_s": 0.1 * jax.random.normal(ks[8], (temporal_slots.shape[0], I), jnp.float32),
        "embed_q": 0.1 * jax.random.normal(ks[9], (spatial_slots.shape[0], I), jnp.float32),
    }

    # Inputs (batch_l is the location feature sequence; batch_t / batch_d are
    # temporal intervals / spatial distances used for slot interpolation).
    batch_l = jax.random.normal(ks[10], (B, T, I), jnp.float32)
    kt, kd = jax.random.split(ks[11])
    batch_t = jax.random.uniform(kt, (B, T), jnp.float32, 0.0, 20.0)   # some > max slot
    batch_d = jax.random.uniform(kd, (B, T), jnp.float32, 0.0, 12.0)

    # Slot interpolation + embedding lookup (glue, matches cal_inter()).
    t_ld, t_hd, t_l, t_h = cal_slot_distance_batch_jax(batch_t, temporal_slots)
    d_ld, d_hd, d_l, d_h = cal_slot_distance_batch_jax(batch_d, spatial_slots)
    batch_s = cal_inter(t_ld, t_hd, t_l, t_h, params["embed_s"])
    batch_q = cal_inter(d_ld, d_hd, d_l, d_h, params["embed_q"])

    logits = stlstm_classifier_pallas(batch_l, batch_s, batch_q, params)
    logits = jax.block_until_ready(logits)

    ref = stlstm_classifier_ref(batch_l, batch_s, batch_q, params)
    np.testing.assert_allclose(np.asarray(logits), np.asarray(ref),
                               rtol=1e-5, atol=1e-5)

    print("KERNEL_OK")
</pallas_src>

<mosaic_0001>
module attributes {stable_mosaic.version = 11 : i64} {
  func.func @kernel(%arg0: i32, %arg1: memref<16x48xf32, #tpu.memory_space<vmem>>, %arg2: memref<48x128xf32, #tpu.memory_space<vmem>>, %arg3: memref<1x128xf32, #tpu.memory_space<vmem>>, %arg4: memref<32x128xf32, #tpu.memory_space<vmem>>, %arg5: memref<32x128xf32, #tpu.memory_space<vmem>>, %arg6: memref<1x128xf32, #tpu.memory_space<vmem>>, %arg7: memref<2x128xf32, #tpu.memory_space<vmem>>) attributes {dimension_semantics = [#tpu.dimension_semantics<arbitrary>], iteration_bounds = array<i64: 1>, scalar_prefetch = 0 : i64, scratch_operands = 0 : i64, tpu.core_type = #tpu.core_type<tc>, window_params = [{pipeline_mode = #tpu.pipeline_mode<synchronous>, transform_indices = @transform_0, window_bounds = array<i64: 16, 48>}, {pipeline_mode = #tpu.pipeline_mode<synchronous>, transform_indices = @transform_1, window_bounds = array<i64: 48, 128>}, {pipeline_mode = #tpu.pipeline_mode<synchronous>, transform_indices = @transform_2, window_bounds = array<i64: 1, 128>}, {pipeline_mode = #tpu.pipeline_mode<synchronous>, transform_indices = @transform_3, window_bounds = array<i64: 32, 128>}, {pipeline_mode = #tpu.pipeline_mode<synchronous>, transform_indices = @transform_4, window_bounds = array<i64: 32, 128>}, {pipeline_mode = #tpu.pipeline_mode<synchronous>, transform_indices = @transform_5, window_bounds = array<i64: 1, 128>}, {pipeline_mode = #tpu.pipeline_mode<synchronous>, transform_indices = @transform_6, window_bounds = array<i64: 2, 128>}]} {
    %c0 = arith.constant 0 : index
    %c0_0 = arith.constant 0 : index
    %0 = vector.load %arg1[%c0, %c0_0] : memref<16x48xf32, #tpu.memory_space<vmem>>, vector<16x48xf32>
    %c0_1 = arith.constant 0 : index
    %c0_2 = arith.constant 0 : index
    %1 = vector.load %arg2[%c0_1, %c0_2] : memref<48x128xf32, #tpu.memory_space<vmem>>, vector<48x128xf32>
    %cst = arith.constant dense<0.000000e+00> : vector<16x128xf32>
    %2 = tpu.matmul %0, %1, %cst {dimension_numbers = #tpu.dot_dimension_numbers<[1], [0], [0], [1], [0, 0, 1, 1], [], []>} : vector<16x48xf32>, vector<48x128xf32>, vector<16x128xf32> -> vector<16x128xf32>
    %c0_3 = arith.constant 0 : index
    %c0_4 = arith.constant 0 : index
    %3 = vector.load %arg3[%c0_3, %c0_4] : memref<1x128xf32, #tpu.memory_space<vmem>>, vector<1x128xf32>
    %4 = vector.broadcast %3 : vector<1x128xf32> to vector<16x128xf32>
    %5 = arith.addf %2, %4 : vector<16x128xf32>
    %c0_5 = arith.constant 0 : index
    %c0_6 = arith.constant 0 : index
    %6 = vector.load %arg4[%c0_5, %c0_6] : memref<32x128xf32, #tpu.memory_space<vmem>>, vector<32x128xf32>
    %cst_7 = arith.constant 0.000000e+00 : f32
    %7 = vector.broadcast %cst_7 : f32 to vector<2x32xf32>
    %cst_8 = arith.constant 0.000000e+00 : f32
    %8 = vector.broadcast %cst_8 : f32 to vector<2x32xf32>
    %9 = vector.extract_strided_slice %5 {offsets = [0, 0], sizes = [2, 128], strides = [1, 1]} : vector<16x128xf32> to vector<2x128xf32>
    %cst_9 = arith.constant dense<0.000000e+00> : vector<2x128xf32>
    %10 = tpu.matmul %7, %6, %cst_9 {dimension_numbers = #tpu.dot_dimension_numbers<[1], [0], [0], [1], [0, 0, 1, 1], [], []>} : vector<2x32xf32>, vector<32x128xf32>, vector<2x128xf32> -> vector<2x128xf32>
    %11 = arith.addf %9, %10 : vector<2x128xf32>
    %12 = vector.extract_strided_slice %11 {offsets = [0, 0], sizes = [2, 32], strides = [1, 1]} : vector<2x128xf32> to vector<2x32xf32>
    %13 = arith.negf %12 : vector<2x32xf32>
    %14 = math.exp %13 : vector<2x32xf32>
    %cst_10 = arith.constant 1.000000e+00 : f32
    %15 = vector.broadcast %cst_10 : f32 to vector<2x32xf32>
    %16 = arith.addf %15, %14 : vector<2x32xf32>
    %17 = arith.divf %15, %16 : vector<2x32xf32>
    %18 = vector.extract_strided_slice %11 {offsets = [0, 32], sizes = [2, 32], strides = [1, 1]} : vector<2x128xf32> to vector<2x32xf32>
    %19 = arith.negf %18 : vector<2x32xf32>
    %20 = math.exp %19 : vector<2x32xf32>
    %cst_11 = arith.constant 1.000000e+00 : f32
    %21 = vector.broadcast %cst_11 : f32 to vector<2x32xf32>
    %22 = arith.addf %21, %20 : vector<2x32xf32>
    %23 = arith.divf %21, %22 : vector<2x32xf32>
    %24 = vector.extract_strided_slice %11 {offsets = [0, 64], sizes = [2, 32], strides = [1, 1]} : vector<2x128xf32> to vector<2x32xf32>
    %25 = math.tanh %24 : vector<2x32xf32>
    %26 = vector.extract_strided_slice %11 {offsets = [0, 96], sizes = [2, 32], strides = [1, 1]} : vector<2x128xf32> to vector<2x32xf32>
    %27 = arith.negf %26 : vector<2x32xf32>
    %28 = math.exp %27 : vector<2x32xf32>
    %cst_12 = arith.constant 1.000000e+00 : f32
    %29 = vector.broadcast %cst_12 : f32 to vector<2x32xf32>
    %30 = arith.addf %29, %28 : vector<2x32xf32>
    %31 = arith.divf %29, %30 : vector<2x32xf32>
    %32 = arith.mulf %23, %8 : vector<2x32xf32>
    %33 = arith.mulf %17, %25 : vector<2x32xf32>
    %34 = arith.addf %32, %33 : vector<2x32xf32>
    %35 = math.tanh %34 : vector<2x32xf32>
    %36 = arith.mulf %31, %35 : vector<2x32xf32>
    %37 = vector.extract_strided_slice %5 {offsets = [2, 0], sizes = [2, 128], strides = [1, 1]} : vector<16x128xf32> to vector<2x128xf32>
    %cst_13 = arith.constant dense<0.000000e+00> : vector<2x128xf32>
    %38 = tpu.matmul %36, %6, %cst_13 {dimension_numbers = #tpu.dot_dimension_numbers<[1], [0], [0], [1], [0, 0, 1, 1], [], []>} : vector<2x32xf32>, vector<32x128xf32>, vector<2x128xf32> -> vector<2x128xf32>
    %39 = arith.addf %37, %38 : vector<2x128xf32>
    %40 = vector.extract_strided_slice %39 {offsets = [0, 0], sizes = [2, 32], strides = [1, 1]} : vector<2x128xf32> to vector<2x32xf32>
    %41 = arith.negf %40 : vector<2x32xf32>
    %42 = math.exp %41 : vector<2x32xf32>
    %cst_14 = arith.constant 1.000000e+00 : f32
    %43 = vector.broadcast %cst_14 : f32 to vector<2x32xf32>
    %44 = arith.addf %43, %42 : vector<2x32xf32>
    %45 = arith.divf %43, %44 : vector<2x32xf32>
    %46 = vector.extract_strided_slice %39 {offsets = [0, 32], sizes = [2, 32], strides = [1, 1]} : vector<2x128xf32> to vector<2x32xf32>
    %47 = arith.negf %46 : vector<2x32xf32>
    %48 = math.exp %47 : vector<2x32xf32>
    %cst_15 = arith.constant 1.000000e+00 : f32
    %49 = vector.broadcast %cst_15 : f32 to vector<2x32xf32>
    %50 = arith.addf %49, %48 : vector<2x32xf32>
    %51 = arith.divf %49, %50 : vector<2x32xf32>
    %52 = vector.extract_strided_slice %39 {offsets = [0, 64], sizes = [2, 32], strides = [1, 1]} : vector<2x128xf32> to vector<2x32xf32>
    %53 = math.tanh %52 : vector<2x32xf32>
    %54 = vector.extract_strided_slice %39 {offsets = [0, 96], sizes = [2, 32], strides = [1, 1]} : vector<2x128xf32> to vector<2x32xf32>
    %55 = arith.negf %54 : vector<2x32xf32>
    %56 = math.exp %55 : vector<2x32xf32>
    %cst_16 = arith.constant 1.000000e+00 : f32
    %57 = vector.broadcast %cst_16 : f32 to vector<2x32xf32>
    %58 = arith.addf %57, %56 : vector<2x32xf32>
    %59 = arith.divf %57, %58 : vector<2x32xf32>
    %60 = arith.mulf %51, %34 : vector<2x32xf32>
    %61 = arith.mulf %45, %53 : vector<2x32xf32>
    %62 = arith.addf %60, %61 : vector<2x32xf32>
    %63 = math.tanh %62 : vector<2x32xf32>
    %64 = arith.mulf %59, %63 : vector<2x32xf32>
    %65 = vector.extract_strided_slice %5 {offsets = [4, 0], sizes = [2, 128], strides = [1, 1]} : vector<16x128xf32> to vector<2x128xf32>
    %cst_17 = arith.constant dense<0.000000e+00> : vector<2x128xf32>
    %66 = tpu.matmul %64, %6, %cst_17 {dimension_numbers = #tpu.dot_dimension_numbers<[1], [0], [0], [1], [0, 0, 1, 1], [], []>} : vector<2x32xf32>, vector<32x128xf32>, vector<2x128xf32> -> vector<2x128xf32>
    %67 = arith.addf %65, %66 : vector<2x128xf32>
    %68 = vector.extract_strided_slice %67 {offsets = [0, 0], sizes = [2, 32], strides = [1, 1]} : vector<2x128xf32> to vector<2x32xf32>
    %69 = arith.negf %68 : vector<2x32xf32>
    %70 = math.exp %69 : vector<2x32xf32>
    %cst_18 = arith.constant 1.000000e+00 : f32
    %71 = vector.broadcast %cst_18 : f32 to vector<2x32xf32>
    %72 = arith.addf %71, %70 : vector<2x32xf32>
    %73 = arith.divf %71, %72 : vector<2x32xf32>
    %74 = vector.extract_strided_slice %67 {offsets = [0, 32], sizes = [2, 32], strides = [1, 1]} : vector<2x128xf32> to vector<2x32xf32>
    %75 = arith.negf %74 : vector<2x32xf32>
    %76 = math.exp %75 : vector<2x32xf32>
    %cst_19 = arith.constant 1.000000e+00 : f32
    %77 = vector.broadcast %cst_19 : f32 to vector<2x32xf32>
    %78 = arith.addf %77, %76 : vector<2x32xf32>
    %79 = arith.divf %77, %78 : vector<2x32xf32>
    %80 = vector.extract_strided_slice %67 {offsets = [0, 64], sizes = [2, 32], strides = [1, 1]} : vector<2x128xf32> to vector<2x32xf32>
    %81 = math.tanh %80 : vector<2x32xf32>
    %82 = vector.extract_strided_slice %67 {offsets = [0, 96], sizes = [2, 32], strides = [1, 1]} : vector<2x128xf32> to vector<2x32xf32>
    %83 = arith.negf %82 : vector<2x32xf32>
    %84 = math.exp %83 : vector<2x32xf32>
    %cst_20 = arith.constant 1.000000e+00 : f32
    %85 = vector.broadcast %cst_20 : f32 to vector<2x32xf32>
    %86 = arith.addf %85, %84 : vector<2x32xf32>
    %87 = arith.divf %85, %86 : vector<2x32xf32>
    %88 = arith.mulf %79, %62 : vector<2x32xf32>
    %89 = arith.mulf %73, %81 : vector<2x32xf32>
    %90 = arith.addf %88, %89 : vector<2x32xf32>
    %91 = math.tanh %90 : vector<2x32xf32>
    %92 = arith.mulf %87, %91 : vector<2x32xf32>
    %93 = vector.extract_strided_slice %5 {offsets = [6, 0], sizes = [2, 128], strides = [1, 1]} : vector<16x128xf32> to vector<2x128xf32>
    %cst_21 = arith.constant dense<0.000000e+00> : vector<2x128xf32>
    %94 = tpu.matmul %92, %6, %cst_21 {dimension_numbers = #tpu.dot_dimension_numbers<[1], [0], [0], [1], [0, 0, 1, 1], [], []>} : vector<2x32xf32>, vector<32x128xf32>, vector<2x128xf32> -> vector<2x128xf32>
    %95 = arith.addf %93, %94 : vector<2x128xf32>
    %96 = vector.extract_strided_slice %95 {offsets = [0, 0], sizes = [2, 32], strides = [1, 1]} : vector<2x128xf32> to vector<2x32xf32>
    %97 = arith.negf %96 : vector<2x32xf32>
    %98 = math.exp %97 : vector<2x32xf32>
    %cst_22 = arith.constant 1.000000e+00 : f32
    %99 = vector.broadcast %cst_22 : f32 to vector<2x32xf32>
    %100 = arith.addf %99, %98 : vector<2x32xf32>
    %101 = arith.divf %99, %100 : vector<2x32xf32>
    %102 = vector.extract_strided_slice %95 {offsets = [0, 32], sizes = [2, 32], strides = [1, 1]} : vector<2x128xf32> to vector<2x32xf32>
    %103 = arith.negf %102 : vector<2x32xf32>
    %104 = math.exp %103 : vector<2x32xf32>
    %cst_23 = arith.constant 1.000000e+00 : f32
    %105 = vector.broadcast %cst_23 : f32 to vector<2x32xf32>
    %106 = arith.addf %105, %104 : vector<2x32xf32>
    %107 = arith.divf %105, %106 : vector<2x32xf32>
    %108 = vector.extract_strided_slice %95 {offsets = [0, 64], sizes = [2, 32], strides = [1, 1]} : vector<2x128xf32> to vector<2x32xf32>
    %109 = math.tanh %108 : vector<2x32xf32>
    %110 = vector.extract_strided_slice %95 {offsets = [0, 96], sizes = [2, 32], strides = [1, 1]} : vector<2x128xf32> to vector<2x32xf32>
    %111 = arith.negf %110 : vector<2x32xf32>
    %112 = math.exp %111 : vector<2x32xf32>
    %cst_24 = arith.constant 1.000000e+00 : f32
    %113 = vector.broadcast %cst_24 : f32 to vector<2x32xf32>
    %114 = arith.addf %113, %112 : vector<2x32xf32>
    %115 = arith.divf %113, %114 : vector<2x32xf32>
    %116 = arith.mulf %107, %90 : vector<2x32xf32>
    %117 = arith.mulf %101, %109 : vector<2x32xf32>
    %118 = arith.addf %116, %117 : vector<2x32xf32>
    %119 = math.tanh %118 : vector<2x32xf32>
    %120 = arith.mulf %115, %119 : vector<2x32xf32>
    %121 = vector.extract_strided_slice %5 {offsets = [8, 0], sizes = [2, 128], strides = [1, 1]} : vector<16x128xf32> to vector<2x128xf32>
    %cst_25 = arith.constant dense<0.000000e+00> : vector<2x128xf32>
    %122 = tpu.matmul %120, %6, %cst_25 {dimension_numbers = #tpu.dot_dimension_numbers<[1], [0], [0], [1], [0, 0, 1, 1], [], []>} : vector<2x32xf32>, vector<32x128xf32>, vector<2x128xf32> -> vector<2x128xf32>
    %123 = arith.addf %121, %122 : vector<2x128xf32>
    %124 = vector.extract_strided_slice %123 {offsets = [0, 0], sizes = [2, 32], strides = [1, 1]} : vector<2x128xf32> to vector<2x32xf32>
    %125 = arith.negf %124 : vector<2x32xf32>
    %126 = math.exp %125 : vector<2x32xf32>
    %cst_26 = arith.constant 1.000000e+00 : f32
    %127 = vector.broadcast %cst_26 : f32 to vector<2x32xf32>
    %128 = arith.addf %127, %126 : vector<2x32xf32>
    %129 = arith.divf %127, %128 : vector<2x32xf32>
    %130 = vector.extract_strided_slice %123 {offsets = [0, 32], sizes = [2, 32], strides = [1, 1]} : vector<2x128xf32> to vector<2x32xf32>
    %131 = arith.negf %130 : vector<2x32xf32>
    %132 = math.exp %131 : vector<2x32xf32>
    %cst_27 = arith.constant 1.000000e+00 : f32
    %133 = vector.broadcast %cst_27 : f32 to vector<2x32xf32>
    %134 = arith.addf %133, %132 : vector<2x32xf32>
    %135 = arith.divf %133, %134 : vector<2x32xf32>
    %136 = vector.extract_strided_slice %123 {offsets = [0, 64], sizes = [2, 32], strides = [1, 1]} : vector<2x128xf32> to vector<2x32xf32>
    %137 = math.tanh %136 : vector<2x32xf32>
    %138 = vector.extract_strided_slice %123 {offsets = [0, 96], sizes = [2, 32], strides = [1, 1]} : vector<2x128xf32> to vector<2x32xf32>
    %139 = arith.negf %138 : vector<2x32xf32>
    %140 = math.exp %139 : vector<2x32xf32>
    %cst_28 = arith.constant 1.000000e+00 : f32
    %141 = vector.broadcast %cst_28 : f32 to vector<2x32xf32>
    %142 = arith.addf %141, %140 : vector<2x32xf32>
    %143 = arith.divf %141, %142 : vector<2x32xf32>
    %144 = arith.mulf %135, %118 : vector<2x32xf32>
    %145 = arith.mulf %129, %137 : vector<2x32xf32>
    %146 = arith.addf %144, %145 : vector<2x32xf32>
    %147 = math.tanh %146 : vector<2x32xf32>
    %148 = arith.mulf %143, %147 : vector<2x32xf32>
    %149 = vector.extract_strided_slice %5 {offsets = [10, 0], sizes = [2, 128], strides = [1, 1]} : vector<16x128xf32> to vector<2x128xf32>
    %cst_29 = arith.constant dense<0.000000e+00> : vector<2x128xf32>
    %150 = tpu.matmul %148, %6, %cst_29 {dimension_numbers = #tpu.dot_dimension_numbers<[1], [0], [0], [1], [0, 0, 1, 1], [], []>} : vector<2x32xf32>, vector<32x128xf32>, vector<2x128xf32> -> vector<2x128xf32>
    %151 = arith.addf %149, %150 : vector<2x128xf32>
    %152 = vector.extract_strided_slice %151 {offsets = [0, 0], sizes = [2, 32], strides = [1, 1]} : vector<2x128xf32> to vector<2x32xf32>
    %153 = arith.negf %152 : vector<2x32xf32>
    %154 = math.exp %153 : vector<2x32xf32>
    %cst_30 = arith.constant 1.000000e+00 : f32
    %155 = vector.broadcast %cst_30 : f32 to vector<2x32xf32>
    %156 = arith.addf %155, %154 : vector<2x32xf32>
    %157 = arith.divf %155, %156 : vector<2x32xf32>
    %158 = vector.extract_strided_slice %151 {offsets = [0, 32], sizes = [2, 32], strides = [1, 1]} : vector<2x128xf32> to vector<2x32xf32>
    %159 = arith.negf %158 : vector<2x32xf32>
    %160 = math.exp %159 : vector<2x32xf32>
    %cst_31 = arith.constant 1.000000e+00 : f32
    %161 = vector.broadcast %cst_31 : f32 to vector<2x32xf32>
    %162 = arith.addf %161, %160 : vector<2x32xf32>
    %163 = arith.divf %161, %162 : vector<2x32xf32>
    %164 = vector.extract_strided_slice %151 {offsets = [0, 64], sizes = [2, 32], strides = [1, 1]} : vector<2x128xf32> to vector<2x32xf32>
    %165 = math.tanh %164 : vector<2x32xf32>
    %166 = vector.extract_strided_slice %151 {offsets = [0, 96], sizes = [2, 32], strides = [1, 1]} : vector<2x128xf32> to vector<2x32xf32>
    %167 = arith.negf %166 : vector<2x32xf32>
    %168 = math.exp %167 : vector<2x32xf32>
    %cst_32 = arith.constant 1.000000e+00 : f32
    %169 = vector.broadcast %cst_32 : f32 to vector<2x32xf32>
    %170 = arith.addf %169, %168 : vector<2x32xf32>
    %171 = arith.divf %169, %170 : vector<2x32xf32>
    %172 = arith.mulf %163, %146 : vector<2x32xf32>
    %173 = arith.mulf %157, %165 : vector<2x32xf32>
    %174 = arith.addf %172, %173 : vector<2x32xf32>
    %175 = math.tanh %174 : vector<2x32xf32>
    %176 = arith.mulf %171, %175 : vector<2x32xf32>
    %177 = vector.extract_strided_slice %5 {offsets = [12, 0], sizes = [2, 128], strides = [1, 1]} : vector<16x128xf32> to vector<2x128xf32>
    %cst_33 = arith.constant dense<0.000000e+00> : vector<2x128xf32>
    %178 = tpu.matmul %176, %6, %cst_33 {dimension_numbers = #tpu.dot_dimension_numbers<[1], [0], [0], [1], [0, 0, 1, 1], [], []>} : vector<2x32xf32>, vector<32x128xf32>, vector<2x128xf32> -> vector<2x128xf32>
    %179 = arith.addf %177, %178 : vector<2x128xf32>
    %180 = vector.extract_strided_slice %179 {offsets = [0, 0], sizes = [2, 32], strides = [1, 1]} : vector<2x128xf32> to vector<2x32xf32>
    %181 = arith.negf %180 : vector<2x32xf32>
    %182 = math.exp %181 : vector<2x32xf32>
    %cst_34 = arith.constant 1.000000e+00 : f32
    %183 = vector.broadcast %cst_34 : f32 to vector<2x32xf32>
    %184 = arith.addf %183, %182 : vector<2x32xf32>
    %185 = arith.divf %183, %184 : vector<2x32xf32>
    %186 = vector.extract_strided_slice %179 {offsets = [0, 32], sizes = [2, 32], strides = [1, 1]} : vector<2x128xf32> to vector<2x32xf32>
    %187 = arith.negf %186 : vector<2x32xf32>
    %188 = math.exp %187 : vector<2x32xf32>
    %cst_35 = arith.constant 1.000000e+00 : f32
    %189 = vector.broadcast %cst_35 : f32 to vector<2x32xf32>
    %190 = arith.addf %189, %188 : vector<2x32xf32>
    %191 = arith.divf %189, %190 : vector<2x32xf32>
    %192 = vector.extract_strided_slice %179 {offsets = [0, 64], sizes = [2, 32], strides = [1, 1]} : vector<2x128xf32> to vector<2x32xf32>
    %193 = math.tanh %192 : vector<2x32xf32>
    %194 = vector.extract_strided_slice %179 {offsets = [0, 96], sizes = [2, 32], strides = [1, 1]} : vector<2x128xf32> to vector<2x32xf32>
    %195 = arith.negf %194 : vector<2x32xf32>
    %196 = math.exp %195 : vector<2x32xf32>
    %cst_36 = arith.constant 1.000000e+00 : f32
    %197 = vector.broadcast %cst_36 : f32 to vector<2x32xf32>
    %198 = arith.addf %197, %196 : vector<2x32xf32>
    %199 = arith.divf %197, %198 : vector<2x32xf32>
    %200 = arith.mulf %191, %174 : vector<2x32xf32>
    %201 = arith.mulf %185, %193 : vector<2x32xf32>
    %202 = arith.addf %200, %201 : vector<2x32xf32>
    %203 = math.tanh %202 : vector<2x32xf32>
    %204 = arith.mulf %199, %203 : vector<2x32xf32>
    %205 = vector.extract_strided_slice %5 {offsets = [14, 0], sizes = [2, 128], strides = [1, 1]} : vector<16x128xf32> to vector<2x128xf32>
    %cst_37 = arith.constant dense<0.000000e+00> : vector<2x128xf32>
    %206 = tpu.matmul %204, %6, %cst_37 {dimension_numbers = #tpu.dot_dimension_numbers<[1], [0], [0], [1], [0, 0, 1, 1], [], []>} : vector<2x32xf32>, vector<32x128xf32>, vector<2x128xf32> -> vector<2x128xf32>
    %207 = arith.addf %205, %206 : vector<2x128xf32>
    %208 = vector.extract_strided_slice %207 {offsets = [0, 0], sizes = [2, 32], strides = [1, 1]} : vector<2x128xf32> to vector<2x32xf32>
    %209 = arith.negf %208 : vector<2x32xf32>
    %210 = math.exp %209 : vector<2x32xf32>
    %cst_38 = arith.constant 1.000000e+00 : f32
    %211 = vector.broadcast %cst_38 : f32 to vector<2x32xf32>
    %212 = arith.addf %211, %210 : vector<2x32xf32>
    %213 = arith.divf %211, %212 : vector<2x32xf32>
    %214 = vector.extract_strided_slice %207 {offsets = [0, 32], sizes = [2, 32], strides = [1, 1]} : vector<2x128xf32> to vector<2x32xf32>
    %215 = arith.negf %214 : vector<2x32xf32>
    %216 = math.exp %215 : vector<2x32xf32>
    %cst_39 = arith.constant 1.000000e+00 : f32
    %217 = vector.broadcast %cst_39 : f32 to vector<2x32xf32>
    %218 = arith.addf %217, %216 : vector<2x32xf32>
    %219 = arith.divf %217, %218 : vector<2x32xf32>
    %220 = vector.extract_strided_slice %207 {offsets = [0, 64], sizes = [2, 32], strides = [1, 1]} : vector<2x128xf32> to vector<2x32xf32>
    %221 = math.tanh %220 : vector<2x32xf32>
    %222 = vector.extract_strided_slice %207 {offsets = [0, 96], sizes = [2, 32], strides = [1, 1]} : vector<2x128xf32> to vector<2x32xf32>
    %223 = arith.negf %222 : vector<2x32xf32>
    %224 = math.exp %223 : vector<2x32xf32>
    %cst_40 = arith.constant 1.000000e+00 : f32
    %225 = vector.broadcast %cst_40 : f32 to vector<2x32xf32>
    %226 = arith.addf %225, %224 : vector<2x32xf32>
    %227 = arith.divf %225, %226 : vector<2x32xf32>
    %228 = arith.mulf %219, %202 : vector<2x32xf32>
    %229 = arith.mulf %213, %221 : vector<2x32xf32>
    %230 = arith.addf %228, %229 : vector<2x32xf32>
    %231 = math.tanh %230 : vector<2x32xf32>
    %232 = arith.mulf %227, %231 : vector<2x32xf32>
    %c0_41 = arith.constant 0 : index
    %c0_42 = arith.constant 0 : index
    %233 = vector.load %arg5[%c0_41, %c0_42] : memref<32x128xf32, #tpu.memory_space<vmem>>, vector<32x128xf32>
    %cst_43 = arith.constant dense<0.000000e+00> : vector<2x128xf32>
    %234 = tpu.matmul %232, %233, %cst_43 {dimension_numbers = #tpu.dot_dimension_numbers<[1], [0], [0], [1], [0, 0, 1, 1], [], []>} : vector<2x32xf32>, vector<32x128xf32>, vector<2x128xf32> -> vector<2x128xf32>
    %c0_44 = arith.constant 0 : index
    %c0_45 = arith.constant 0 : index
    %235 = vector.load %arg6[%c0_44, %c0_45] : memref<1x128xf32, #tpu.memory_space<vmem>>, vector<1x128xf32>
    %236 = vector.broadcast %235 : vector<1x128xf32> to vector<2x128xf32>
    %237 = arith.addf %234, %236 : vector<2x128xf32>
    %c0_46 = arith.constant 0 : index
    %c0_47 = arith.constant 0 : index
    %238 = vector.load %arg7[%c0_46, %c0_47] : memref<2x128xf32, #tpu.memory_space<vmem>>, vector<2x128xf32>
    tpu.vector_store %arg7[%c0_46, %c0_47], %237 {strides = array<i32>} : memref<2x128xf32, #tpu.memory_space<vmem>>, vector<2x128xf32>,
    return
  }
  func.func @transform_0(%arg0: i32) -> (i32, i32) {
    %c0_i32 = arith.constant 0 : i32
    %c0_i32_0 = arith.constant 0 : i32
    %c0_i32_1 = arith.constant 0 : i32
    return %c0_i32, %c0_i32_0 : i32, i32
  }
  func.func @transform_1(%arg0: i32) -> (i32, i32) {
    %c0_i32 = arith.constant 0 : i32
    %c0_i32_0 = arith.constant 0 : i32
    %c0_i32_1 = arith.constant 0 : i32
    return %c0_i32, %c0_i32_0 : i32, i32
  }
  func.func @transform_2(%arg0: i32) -> (i32, i32) {
    %c0_i32 = arith.constant 0 : i32
    %c0_i32_0 = arith.constant 0 : i32
    %c0_i32_1 = arith.constant 0 : i32
    return %c0_i32, %c0_i32_0 : i32, i32
  }
  func.func @transform_3(%arg0: i32) -> (i32, i32) {
    %c0_i32 = arith.constant 0 : i32
    %c0_i32_0 = arith.constant 0 : i32
    %c0_i32_1 = arith.constant 0 : i32
    return %c0_i32, %c0_i32_0 : i32, i32
  }
  func.func @transform_4(%arg0: i32) -> (i32, i32) {
    %c0_i32 = arith.constant 0 : i32
    %c0_i32_0 = arith.constant 0 : i32
    %c0_i32_1 = arith.constant 0 : i32
    return %c0_i32, %c0_i32_0 : i32, i32
  }
  func.func @transform_5(%arg0: i32) -> (i32, i32) {
    %c0_i32 = arith.constant 0 : i32
    %c0_i32_0 = arith.constant 0 : i32
    %c0_i32_1 = arith.constant 0 : i32
    return %c0_i32, %c0_i32_0 : i32, i32
  }
  func.func @transform_6(%arg0: i32) -> (i32, i32) {
    %c0_i32 = arith.constant 0 : i32
    %c0_i32_0 = arith.constant 0 : i32
    %c0_i32_1 = arith.constant 0 : i32
    return %c0_i32, %c0_i32_0 : i32, i32
  }
}

</mosaic_0001>

<bundles_post_ra>
// kernel: tpu_custom_call.1
= control target key start
LH: loop header
LB: loop body
LE: loop exit
PB: predicated region body
PF: predicated region fallthrough
CT: control target
= control target key end

     0   :  { %11 = vsyncpa [#allocation3], 0  ;;  %s1120_s0 = inlined_call_operand.hbm [shape: f32[16,48], index: 0, kind: input, shape index: {}]   ;;  %s1121_s1 = inlined_call_operand.hbm [shape: f32[48,128], index: 1, kind: input, shape index: {}]   ;;  %s1122_s2 = inlined_call_operand.vmem [shape: f32[1,128], index: 2, kind: input, shape index: {}]   ;;  %s1123_s3 = inlined_call_operand.hbm [shape: f32[32,128], index: 3, kind: input, shape index: {}]   ;;  %s1124_s4 = inlined_call_operand.hbm [shape: f32[32,128], index: 4, kind: input, shape index: {}]   ;;  %s1125_s5 = inlined_call_operand.vmem [shape: f32[1,128], index: 5, kind: input, shape index: {}]   ;;  %s1126_s6 = inlined_call_operand.hbm [shape: f32[2,128], index: 6, kind: output, shape index: {}]  }
   0x1   :  { %12 = vsyncpa [#allocation6], 0 }
   0x2   :  { %13 = vsyncpa [#allocation9], 0 }
   0x3   :  { %14 = vsyncpa [#allocation4], 0  ;;  %s32_s23 = sshll.u32 %s1121_s1, 4  ;;  %s956_s24 = smov [#allocation5]   ;;  %s33_s23 = int_to_ptr.hbm [resolvable:$true] %s32_s23 }
   0x4   :  { %s34_s25 = sshll.u32 %s956_s24, 4  ;;  %s19_s28 = sshll.u32 %s1120_s0, 4  ;;  %s35_s25 = int_to_ptr.vmem [resolvable:$true] %s34_s25  ;;  %s20_s28 = int_to_ptr.hbm [resolvable:$true] %s19_s28 }
   0x5   :  { %s957_s29 = smov 128   ;;  %s958_s30 = smov 8  }
   0x6   :  { %40 = dma.hbm_to_vmem [thread:$0]  %s33_s23, 768, %s35_s25, [#allocation6], %s957_s29, %s957_s29, %s958_s30  }
   0x7   :  { %s959_s7 = smov [#allocation2]   ;;  %s47_s11 = sshll.u32 %s1123_s3, 4  ;;  %s48_s11 = int_to_ptr.hbm [resolvable:$true] %s47_s11 }
   0x8   :  { %s21_s8 = sshll.u32 %s959_s7, 4  ;;  %s60_s13 = sshll.u32 %s1124_s4, 4  ;;  %s22_s8 = int_to_ptr.vmem [resolvable:$true] %s21_s8  ;;  %s61_s13 = int_to_ptr.hbm [resolvable:$true] %s60_s13 }
   0x9   :  { %27 = dma.hbm_to_vmem [thread:$0]  %s20_s28, 256, %s22_s8, [#allocation3], %s957_s29, %s957_s29, %s958_s30  }
   0xa   :  { %s960_s14 = smov [#allocation7]   ;;  %s961_s0 = smov [#allocation8]  }
   0xb   :  { %s49_s15 = sshll.u32 %s960_s14, 4  ;;  %s62_s16 = sshll.u32 %s961_s0, 4  ;;  %s50_s15 = int_to_ptr.vmem [resolvable:$true] %s49_s15  ;;  %s63_s16 = int_to_ptr.vmem [resolvable:$true] %s62_s16 }
   0xc   :  { %55 = dma.hbm_to_vmem [thread:$0]  %s48_s11, 512, %s50_s15, [#allocation6], %s957_s29, %s957_s29, %s958_s30  }
   0xd   :  { %68 = dma.hbm_to_vmem [thread:$0]  %s61_s13, 512, %s63_s16, [#allocation9], %s957_s29, %s957_s29, %s958_s30  }
   0xe   :  { %948 = dma.done.wait [#allocation3], 256  }
   0xf   :  { %949 = vsyncadd [#allocation3], 4294967040 }
  0x10   :  { %950 = dma.done.wait [#allocation6], 1280  }
  0x11   :  { %951 = vsyncadd [#allocation6], 4294966016 }
  0x12   :  { %952 = dma.done.wait [#allocation9], 512  }
  0x13   :  { %953 = vsyncadd [#allocation9], 4294966784  ;;  %v94_v0 = vld [vmem:[#allocation5 + $0x28] sm:$0xff]  ;;  %v93_v1 = vld [vmem:[#allocation5 + $0x20] sm:$0xff]  ;;  %vm99_vm0 = vcmask 392192   ;;  %v962_v11 = vmov 0.0  }
  0x14   :  { %116 = vmatpush.msra.mxu0 %v94_v0  ;;  %v1013_v2 = vld [vmem:[#allocation7 + $0x18] sm:$0xff]  ;;  %v92_v3 = vld [vmem:[#allocation5 + $0x18] sm:$0xff]  ;;  %v1016_v4 = vld [vmem:[#allocation7 + $0x10] sm:$0xff]  ;;  %s963_s17 = smov 64   ;;  %vm133_vm5 = vcmask 261120   ;;  %s965_s20 = smov [#allocation10]  }
  0x15   :  { %149 = vmatpush.msra.mxu1 %v1013_v2  ;;  %212 = vmatpush.msra.mxu2 %v1013_v2  ;;  %v1019_v5 = vld [vmem:[#allocation7 + $0x8] sm:$0xff]  ;;  %v91_v6 = vld [vmem:[#allocation5 + $0x10] sm:$0xff]  ;;  %v90_v8 = vld [vmem:[#allocation5 + $0x8] sm:$0xff]  ;;  %s720_s21 = sshll.u32 %s965_s20, 4  ;;  %s722_s24 = sshll.u32 %s1126_s6, 4  ;;  %s721_s21 = int_to_ptr.vmem [resolvable:$true] %s720_s21  ;;  %s723_s24 = int_to_ptr.hbm [resolvable:$true] %s722_s24 }
  0x16   :  { %117 = vmatpush.msra.mxu0 %v93_v1  ;;  %282 = vmatpush.msra.mxu3 %v1013_v2  ;;  %v1024_v7 = vld [vmem:[#allocation7] sm:$0xff]  ;;  %v89_v9 = vld [vmem:[#allocation5] sm:$0xff] }
  0x17   :  { %150 = vmatpush.msra.mxu1 %v1016_v4  ;;  %213 = vmatpush.msra.mxu2 %v1016_v4  ;;  %v87_v10 = vld [vmem:[#allocation2] sm:$0xff] }
  0x18   :  { %118 = vmatpush.msra.mxu0 %v92_v3  ;;  %283 = vmatpush.msra.mxu3 %v1016_v4  ;;  %v1053_v12 = vld [vmem:[%s1122_s2] ss:$0 sm:$0xff]  ;;  %s964_s2 = smov 32  }
  0x19   :  { %151 = vmatpush.msra.mxu1 %v1019_v5  ;;  %214 = vmatpush.msra.mxu2 %v1019_v5 }
  0x1a   :  { %119 = vmatpush.msra.mxu0 %v91_v6  ;;  %284 = vmatpush.msra.mxu3 %v1019_v5 }
  0x1b   :  { %152 = vmatpush.msra.mxu1 %v1024_v7  ;;  %215 = vmatpush.msra.mxu2 %v1024_v7 }
  0x1c   :  { %120 = vmatpush.msra.mxu0 %v90_v8  ;;  %153 = vmatmul.f32.vlgmr.msra.gmra.mxu1 %v962_v11 }
  0x1d   :  { %285 = vmatpush.msra.mxu3 %v1024_v7  ;;  %352 = vmatpush.msrb.mxu1 %v1013_v2 }
  0x1e   :  { %121 = vmatpush.msra.mxu0 %v89_v9  ;;  %422 = vmatpush.msrb.mxu2 %v1013_v2 }
  0x1f   :  { %734 = vmatmul.msk.f32.vlgmr.msra.gmra.mxu0 %vm99_vm0, %v87_v10  ;;  %353 = vmatpush.msrb.mxu1 %v1016_v4 }
  0x20   :  { %423 = vmatpush.msrb.mxu2 %v1016_v4  ;;  %488 = vmatpush.msrb.mxu3 %v1013_v2 }
  0x21   :  { %354 = vmatpush.msrb.mxu1 %v1019_v5 }
  0x22   :  { %424 = vmatpush.msrb.mxu2 %v1019_v5  ;;  %489 = vmatpush.msrb.mxu3 %v1016_v4 }
  0x23   :  { %355 = vmatpush.msrb.mxu1 %v1024_v7 }
  0x24   :  { %425 = vmatpush.msrb.mxu2 %v1024_v7  ;;  %490 = vmatpush.msrb.mxu3 %v1019_v5 }
  0x25   :  { %558 = vmatpush.msra.mxu1 %v1013_v2 }
  0x26   :  { %491 = vmatpush.msrb.mxu3 %v1024_v7 }
  0x27   :  { %559 = vmatpush.msra.mxu1 %v1016_v4 }
  0x29   :  { %560 = vmatpush.msra.mxu1 %v1019_v5 }
  0x2b   :  { %561 = vmatpush.msra.mxu1 %v1024_v7 }
  0x99   :  { %v154_v14 = vpop.f32.mrf.mxu1 }
  0x9c   :  { %v123_v13 = vpop.f32.mrf.mxu0 }
  0x9d   :  { %v1056_v15 = vadd.f32 %v1053_v12, %v123_v13 }
  0x9f   :  { %v157_v16 = vadd.f32 %v154_v14, %v1056_v15 }
  0xa1   :  { %764 = vtanh.f32 %v157_v16  ;;  %v736_v18 = vmul.f32 -1.442695, %v157_v16 }
  0xa3   :  { %766 = vpow2.f32 %v736_v18 }
  0xa7   :  { %v765_v17 = vpop.eup %764 }
  0xa8   :  { %180 = vrot.lane.b32.xlu0 %v765_v17, %s963_s17 }
  0xa9   :  { %v767_v19 = vpop.eup %766 }
  0xaa   :  { %v161_v20 = vadd.f32 1.0, %v767_v19 }
  0xac   :  { %768 = vrcp.f32 %v161_v20  ;;  %v173_v26 = vand.u32 2147483648, %v161_v20  ;;  %vm167_vm2 = vweird.f32 %v161_v20  ;;  %v171_v27 = vand.u32 2147483647, %v161_v20 }
  0xae   :  { %v174_v29 = vor.u32 1.1754944e-38, %v173_v26  ;;  %vm172_vm4 = vcmp.eq.f32.partialorder %v171_v27, 8.507059e+37 }
  0xb2   :  { %v769_v21 = vpop.eup %768 }
  0xb3   :  { %v163_v22 = vmul.f32 %v769_v21, %v161_v20  ;;  %vm168_vm1 = vweird.f32 %v769_v21 }
  0xb4   :  { %vm169_vm3 = vmor %vm167_vm2, %vm168_vm1 }
  0xb5   :  { %v164_v23 = vsub.f32 1.0, %v163_v22 }
  0xb7   :  { %v165_v24 = vmul.f32 %v769_v21, %v164_v23 }
  0xb9   :  { %v166_v25 = vadd.f32 %v769_v21, %v165_v24 }
  0xbb   :  { %v170_v28 = vsel %vm169_vm3, %v769_v21, %v166_v25 }
  0xbc   :  { %v175_v31 = vsel %vm172_vm4, %v174_v29, %v170_v28 }
  0xbd   :  { %v178_v33 = vmul.f32 0.0, %v175_v31 }
 0x11a   :  { %v181_v30 = vpop.permute.xlu0 %180 }
 0x11b   :  { %v183_v32 = vmul.f32 %v181_v30, %v175_v31 }
 0x11d   :  { %185 = vrot.lane.b32.xlu0 %v183_v32, %s964_s2 }
 0x18f   :  { %v186_v34 = vpop.permute.xlu0 %185 }
 0x190   :  { %v188_v35 = vadd.f32 %v186_v34, %v178_v33 }
 0x192   :  { %770 = vtanh.f32 %v188_v35  ;;  %v245_v59 = vrot.slane %v188_v35, 6 }
 0x198   :  { %v771_v36 = vpop.eup %770 }
 0x199   :  { %191 = vrot.lane.b32.xlu1 %v771_v36, %s963_s17 }
 0x20b   :  { %v192_v37 = vpop.permute.xlu1 %191 }
 0x20c   :  { %v194_v38 = vmul.f32 %v192_v37, %v175_v31 }
 0x20e   :  { %196 = vrot.lane.b32.xlu1 %v194_v38, %s964_s2 }
 0x280   :  { %v197_v39 = vpop.permute.xlu1 %196 }
 0x281   :  { %737 = vmatmul.msk.f32.vlgmr.msra.gmra.mxu2 %vm133_vm5, %v197_v39 }
 0x282   :  { %628 = vmatpush.msra.mxu2 %v1013_v2 }
 0x284   :  { %629 = vmatpush.msra.mxu2 %v1016_v4 }
 0x286   :  { %630 = vmatpush.msra.mxu2 %v1019_v5 }
 0x288   :  { %631 = vmatpush.msra.mxu2 %v1024_v7 }
 0x304   :  { %v217_v40 = vpop.f32.mrf.mxu2 }
 0x305   :  { %v221_v41 = vrot.slane %v217_v40, 6 }
 0x307   :  { %v223_v42 = vadd.f32 %v221_v41, %v1056_v15 }
 0x309   :  { %772 = vtanh.f32 %v223_v42  ;;  %v738_v44 = vmul.f32 -1.442695, %v223_v42 }
 0x30b   :  { %774 = vpow2.f32 %v738_v44 }
 0x30f   :  { %v773_v43 = vpop.eup %772 }
 0x310   :  { %249 = vrot.lane.b32.xlu2 %v773_v43, %s963_s17 }
 0x311   :  { %v775_v45 = vpop.eup %774 }
 0x312   :  { %v227_v46 = vadd.f32 1.0, %v775_v45 }
 0x314   :  { %776 = vrcp.f32 %v227_v46  ;;  %v239_v52 = vand.u32 2147483648, %v227_v46  ;;  %vm233_vm7 = vweird.f32 %v227_v46  ;;  %v237_v53 = vand.u32 2147483647, %v227_v46 }
 0x316   :  { %v240_v55 = vor.u32 1.1754944e-38, %v239_v52  ;;  %vm238_vm9 = vcmp.eq.f32.partialorder %v237_v53, 8.507059e+37 }
 0x31a   :  { %v777_v47 = vpop.eup %776 }
 0x31b   :  { %v229_v48 = vmul.f32 %v777_v47, %v227_v46  ;;  %vm234_vm6 = vweird.f32 %v777_v47 }
 0x31c   :  { %vm235_vm8 = vmor %vm233_vm7, %vm234_vm6 }
 0x31d   :  { %v230_v49 = vsub.f32 1.0, %v229_v48 }
 0x31f   :  { %v231_v50 = vmul.f32 %v777_v47, %v230_v49 }
 0x321   :  { %v232_v51 = vadd.f32 %v777_v47, %v231_v50 }
 0x323   :  { %v236_v54 = vsel %vm235_vm8, %v777_v47, %v232_v51 }
 0x324   :  { %v241_v57 = vsel %vm238_vm9, %v240_v55, %v236_v54 }
 0x325   :  { %v247_v60 = vmul.f32 %v245_v59, %v241_v57 }
 0x36a   :  { %v250_v56 = vpop.permute.xlu2 %249 }
 0x36b   :  { %v252_v58 = vmul.f32 %v250_v56, %v241_v57 }
 0x36d   :  { %254 = vrot.lane.b32.xlu2 %v252_v58, %s964_s2 }
 0x3c7   :  { %v255_v61 = vpop.permute.xlu2 %254 }
 0x3c8   :  { %v257_v62 = vadd.f32 %v255_v61, %v247_v60  ;;  %v88_v60 = vld [vmem:[#allocation2 + $0x8] sm:$0xff] }
 0x3c9   :  { %735 = vmatmul.msk.f32.gmra.mxu0 %vm99_vm0, %v88_v60 }
 0x3ca   :  { %778 = vtanh.f32 %v257_v62  ;;  %v315_v25 = vrot.slane %v257_v62, 6 }
 0x3d0   :  { %v779_v63 = vpop.eup %778 }
 0x3d1   :  { %260 = vrot.lane.b32.xlu0 %v779_v63, %s963_s17 }
 0x443   :  { %v261_v0 = vpop.permute.xlu0 %260 }
 0x444   :  { %v263_v1 = vmul.f32 %v261_v0, %v241_v57 }
 0x446   :  { %v265_v2 = vrot.slane %v263_v1, 2  ;;  %v126_v62 = vpop.f32.mrf.mxu0 }
 0x447   :  { %v1088_v63 = vadd.f32 %v1053_v12, %v126_v62 }
 0x448   :  { %266 = vrot.lane.b32.xlu1 %v265_v2, %s964_s2 }
 0x4ba   :  { %v267_v3 = vpop.permute.xlu1 %266 }
 0x4bb   :  { %739 = vmatmul.msk.f32.vlgmr.msra.gmra.mxu3 %vm133_vm5, %v267_v3 }
 0x53e   :  { %v287_v4 = vpop.f32.mrf.mxu3 }
 0x53f   :  { %v291_v5 = vrot.slane %v287_v4, 4 }
 0x541   :  { %v293_v6 = vadd.f32 %v291_v5, %v1056_v15 }
 0x543   :  { %780 = vtanh.f32 %v293_v6  ;;  %v740_v8 = vmul.f32 -1.442695, %v293_v6 }
 0x545   :  { %782 = vpow2.f32 %v740_v8 }
 0x549   :  { %v781_v7 = vpop.eup %780 }
 0x54a   :  { %319 = vrot.lane.b32.xlu2 %v781_v7, %s963_s17 }
 0x54b   :  { %v783_v9 = vpop.eup %782 }
 0x54c   :  { %v297_v10 = vadd.f32 1.0, %v783_v9 }
 0x54e   :  { %784 = vrcp.f32 %v297_v10  ;;  %v309_v18 = vand.u32 2147483648, %v297_v10  ;;  %vm303_vm11 = vweird.f32 %v297_v10  ;;  %v307_v19 = vand.u32 2147483647, %v297_v10 }
 0x550   :  { %v310_v21 = vor.u32 1.1754944e-38, %v309_v18  ;;  %vm308_vm13 = vcmp.eq.f32.partialorder %v307_v19, 8.507059e+37 }
 0x554   :  { %v785_v11 = vpop.eup %784 }
 0x555   :  { %v299_v13 = vmul.f32 %v785_v11, %v297_v10  ;;  %vm304_vm10 = vweird.f32 %v785_v11 }
 0x556   :  { %vm305_vm12 = vmor %vm303_vm11, %vm304_vm10 }
 0x557   :  { %v300_v14 = vsub.f32 1.0, %v299_v13 }
 0x559   :  { %v301_v16 = vmul.f32 %v785_v11, %v300_v14 }
 0x55b   :  { %v302_v17 = vadd.f32 %v785_v11, %v301_v16 }
 0x55d   :  { %v306_v20 = vsel %vm305_vm12, %v785_v11, %v302_v17 }
 0x55e   :  { %v311_v23 = vsel %vm308_vm13, %v310_v21, %v306_v20 }
 0x55f   :  { %v317_v26 = vmul.f32 %v315_v25, %v311_v23 }
 0x5a4   :  { %v320_v22 = vpop.permute.xlu2 %319 }
 0x5a5   :  { %v322_v24 = vmul.f32 %v320_v22, %v311_v23 }
 0x5a7   :  { %324 = vrot.lane.b32.xlu0 %v322_v24, %s964_s2 }
 0x619   :  { %v325_v27 = vpop.permute.xlu0 %324 }
 0x61a   :  { %v327_v28 = vadd.f32 %v325_v27, %v317_v26 }
 0x61c   :  { %786 = vtanh.f32 %v327_v28  ;;  %v385_v52 = vrot.slane %v327_v28, 6 }
 0x622   :  { %v787_v29 = vpop.eup %786 }
 0x623   :  { %330 = vrot.lane.b32.xlu1 %v787_v29, %s963_s17 }
 0x695   :  { %v331_v30 = vpop.permute.xlu1 %330 }
 0x696   :  { %v333_v31 = vmul.f32 %v331_v30, %v311_v23 }
 0x698   :  { %v335_v32 = vrot.slane %v333_v31, 4 }
 0x69a   :  { %336 = vrot.lane.b32.xlu2 %v335_v32, %s964_s2 }
 0x6f4   :  { %v337_v33 = vpop.permute.xlu2 %336 }
 0x6f5   :  { %741 = vmatmul.msk.f32.vlgmr.msrb.gmra.mxu1 %vm133_vm5, %v337_v33 }
 0x772   :  { %v357_v34 = vpop.f32.mrf.mxu1 }
 0x773   :  { %v361_v35 = vrot.slane %v357_v34, 2 }
 0x775   :  { %v363_v36 = vadd.f32 %v361_v35, %v1056_v15 }
 0x777   :  { %788 = vtanh.f32 %v363_v36  ;;  %v742_v38 = vmul.f32 -1.442695, %v363_v36 }
 0x779   :  { %790 = vpow2.f32 %v742_v38 }
 0x77d   :  { %v789_v37 = vpop.eup %788 }
 0x77e   :  { %389 = vrot.lane.b32.xlu0 %v789_v37, %s963_s17 }
 0x77f   :  { %v791_v39 = vpop.eup %790 }
 0x780   :  { %v367_v40 = vadd.f32 1.0, %v791_v39 }
 0x782   :  { %792 = vrcp.f32 %v367_v40  ;;  %v379_v46 = vand.u32 2147483648, %v367_v40  ;;  %vm373_vm15 = vweird.f32 %v367_v40  ;;  %v377_v47 = vand.u32 2147483647, %v367_v40 }
 0x784   :  { %v380_v48 = vor.u32 1.1754944e-38, %v379_v46  ;;  %vm378_vm2 = vcmp.eq.f32.partialorder %v377_v47, 8.507059e+37 }
 0x788   :  { %v793_v41 = vpop.eup %792 }
 0x789   :  { %v369_v42 = vmul.f32 %v793_v41, %v367_v40  ;;  %vm374_vm14 = vweird.f32 %v793_v41 }
 0x78a   :  { %vm375_vm1 = vmor %vm373_vm15, %vm374_vm14 }
 0x78b   :  { %v370_v43 = vsub.f32 1.0, %v369_v42 }
 0x78d   :  { %v371_v44 = vmul.f32 %v793_v41, %v370_v43 }
 0x78f   :  { %v372_v45 = vadd.f32 %v793_v41, %v371_v44 }
 0x791   :  { %v376_v15 = vsel %vm375_vm1, %v793_v41, %v372_v45 }
 0x792   :  { %v381_v50 = vsel %vm378_vm2, %v380_v48, %v376_v15 }
 0x793   :  { %v387_v53 = vmul.f32 %v385_v52, %v381_v50 }
 0x7f0   :  { %v390_v49 = vpop.permute.xlu0 %389 }
 0x7f1   :  { %v392_v51 = vmul.f32 %v390_v49, %v381_v50 }
 0x7f3   :  { %394 = vrot.lane.b32.xlu1 %v392_v51, %s964_s2 }
 0x865   :  { %v395_v54 = vpop.permute.xlu1 %394 }
 0x866   :  { %v397_v55 = vadd.f32 %v395_v54, %v387_v53 }
 0x868   :  { %794 = vtanh.f32 %v397_v55  ;;  %v452_v19 = vrot.slane %v397_v55, 6 }
 0x86e   :  { %v795_v56 = vpop.eup %794 }
 0x86f   :  { %400 = vrot.lane.b32.xlu2 %v795_v56, %s963_s17 }
 0x8c9   :  { %v401_v57 = vpop.permute.xlu2 %400 }
 0x8ca   :  { %v403_v58 = vmul.f32 %v401_v57, %v381_v50 }
 0x8cc   :  { %v405_v59 = vrot.slane %v403_v58, 6 }
 0x8ce   :  { %406 = vrot.lane.b32.xlu0 %v405_v59, %s964_s2 }
 0x940   :  { %v407_v61 = vpop.permute.xlu0 %406 }
 0x941   :  { %743 = vmatmul.msk.f32.vlgmr.msrb.gmra.mxu2 %vm133_vm5, %v407_v61 }
 0x9c4   :  { %v427_v0 = vpop.f32.mrf.mxu2 }
 0x9c5   :  { %v430_v1 = vadd.f32 %v427_v0, %v1088_v63 }
 0x9c7   :  { %796 = vtanh.f32 %v430_v1  ;;  %v744_v3 = vmul.f32 -1.442695, %v430_v1 }
 0x9c9   :  { %798 = vpow2.f32 %v744_v3 }
 0x9cd   :  { %v797_v2 = vpop.eup %796 }
 0x9ce   :  { %456 = vrot.lane.b32.xlu1 %v797_v2, %s963_s17 }
 0x9cf   :  { %v799_v4 = vpop.eup %798 }
 0x9d0   :  { %v434_v5 = vadd.f32 1.0, %v799_v4 }
 0x9d2   :  { %800 = vrcp.f32 %v434_v5  ;;  %v446_v12 = vand.u32 2147483648, %v434_v5  ;;  %vm440_vm3 = vweird.f32 %v434_v5  ;;  %v444_v11 = vand.u32 2147483647, %v434_v5 }
 0x9d4   :  { %v447_v14 = vor.u32 1.1754944e-38, %v446_v12  ;;  %vm445_vm6 = vcmp.eq.f32.partialorder %v444_v11, 8.507059e+37 }
 0x9d8   :  { %v801_v6 = vpop.eup %800 }
 0x9d9   :  { %v436_v7 = vmul.f32 %v801_v6, %v434_v5  ;;  %vm441_vm0 = vweird.f32 %v801_v6 }
 0x9da   :  { %vm442_vm4 = vmor %vm440_vm3, %vm441_vm0 }
 0x9db   :  { %v437_v8 = vsub.f32 1.0, %v436_v7 }
 0x9dd   :  { %v438_v9 = vmul.f32 %v801_v6, %v437_v8 }
 0x9df   :  { %v439_v10 = vadd.f32 %v801_v6, %v438_v9 }
 0x9e1   :  { %v443_v13 = vsel %vm442_vm4, %v801_v6, %v439_v10 }
 0x9e2   :  { %v448_v17 = vsel %vm445_vm6, %v447_v14, %v443_v13 }
 0x9e3   :  { %v454_v20 = vmul.f32 %v452_v19, %v448_v17 }
 0xa40   :  { %v457_v16 = vpop.permute.xlu1 %456 }
 0xa41   :  { %v459_v18 = vmul.f32 %v457_v16, %v448_v17 }
 0xa43   :  { %461 = vrot.lane.b32.xlu2 %v459_v18, %s964_s2 }
 0xa9d   :  { %v462_v21 = vpop.permute.xlu2 %461 }
 0xa9e   :  { %v464_v22 = vadd.f32 %v462_v21, %v454_v20 }
 0xaa0   :  { %802 = vtanh.f32 %v464_v22  ;;  %v521_v46 = vrot.slane %v464_v22, 6 }
 0xaa6   :  { %v803_v23 = vpop.eup %802 }
 0xaa7   :  { %467 = vrot.lane.b32.xlu0 %v803_v23, %s963_s17 }
 0xb19   :  { %v468_v24 = vpop.permute.xlu0 %467 }
 0xb1a   :  { %v470_v25 = vmul.f32 %v468_v24, %v448_v17 }
 0xb1c   :  { %472 = vrot.lane.b32.xlu1 %v470_v25, %s964_s2 }
 0xb8e   :  { %v473_v26 = vpop.permute.xlu1 %472 }
 0xb8f   :  { %745 = vmatmul.msk.f32.vlgmr.msrb.gmra.mxu3 %vm133_vm5, %v473_v26 }
 0xc12   :  { %v493_v27 = vpop.f32.mrf.mxu3 }
 0xc13   :  { %v497_v28 = vrot.slane %v493_v27, 6 }
 0xc15   :  { %v499_v29 = vadd.f32 %v497_v28, %v1088_v63 }
 0xc17   :  { %804 = vtanh.f32 %v499_v29  ;;  %v746_v31 = vmul.f32 -1.442695, %v499_v29 }
 0xc19   :  { %806 = vpow2.f32 %v746_v31 }
 0xc1d   :  { %v805_v30 = vpop.eup %804 }
 0xc1e   :  { %525 = vrot.lane.b32.xlu2 %v805_v30, %s963_s17 }
 0xc1f   :  { %v807_v32 = vpop.eup %806 }
 0xc20   :  { %v503_v33 = vadd.f32 1.0, %v807_v32 }
 0xc22   :  { %808 = vrcp.f32 %v503_v33  ;;  %v515_v39 = vand.u32 2147483648, %v503_v33  ;;  %vm509_vm8 = vweird.f32 %v503_v33  ;;  %v513_v40 = vand.u32 2147483647, %v503_v33 }
 0xc24   :  { %v516_v42 = vor.u32 1.1754944e-38, %v515_v39  ;;  %vm514_vm10 = vcmp.eq.f32.partialorder %v513_v40, 8.507059e+37 }
 0xc28   :  { %v809_v34 = vpop.eup %808 }
 0xc29   :  { %v505_v35 = vmul.f32 %v809_v34, %v503_v33  ;;  %vm510_vm7 = vweird.f32 %v809_v34 }
 0xc2a   :  { %vm511_vm9 = vmor %vm509_vm8, %vm510_vm7 }
 0xc2b   :  { %v506_v36 = vsub.f32 1.0, %v505_v35 }
 0xc2d   :  { %v507_v37 = vmul.f32 %v809_v34, %v506_v36 }
 0xc2f   :  { %v508_v38 = vadd.f32 %v809_v34, %v507_v37 }
 0xc31   :  { %v512_v41 = vsel %vm511_vm9, %v809_v34, %v508_v38 }
 0xc32   :  { %v517_v44 = vsel %vm514_vm10, %v516_v42, %v512_v41 }
 0xc33   :  { %v523_v47 = vmul.f32 %v521_v46, %v517_v44  ;;  %v680_v46 = vld [vmem:[#allocation8] sm:$0xff] }
 0xc78   :  { %v526_v43 = vpop.permute.xlu2 %525 }
 0xc79   :  { %v528_v45 = vmul.f32 %v526_v43, %v517_v44  ;;  %v683_v43 = vld [vmem:[#allocation8 + $0x18] sm:$0xff] }
 0xc7a   :  { %706 = vmatpush.msra.mxu3 %v683_v43 }
 0xc7b   :  { %530 = vrot.lane.b32.xlu0 %v528_v45, %s964_s2  ;;  %v681_v45 = vld [vmem:[#allocation8 + $0x8] sm:$0xff] }
 0xced   :  { %v531_v15 = vpop.permute.xlu0 %530 }
 0xcee   :  { %v533_v48 = vadd.f32 %v531_v15, %v523_v47 }
 0xcf0   :  { %810 = vtanh.f32 %v533_v48  ;;  %v591_v10 = vrot.slane %v533_v48, 6 }
 0xcf6   :  { %v811_v49 = vpop.eup %810 }
 0xcf7   :  { %536 = vrot.lane.b32.xlu1 %v811_v49, %s963_s17 }
 0xd69   :  { %v537_v50 = vpop.permute.xlu1 %536 }
 0xd6a   :  { %v539_v51 = vmul.f32 %v537_v50, %v517_v44  ;;  %v682_v44 = vld [vmem:[#allocation8 + $0x10] sm:$0xff]  ;;  %v763_v50 = vld [vmem:[%s1125_s5] ss:$0 sm:$0xff] }
 0xd6b   :  { %707 = vmatpush.msra.mxu3 %v682_v44 }
 0xd6c   :  { %v541_v52 = vrot.slane %v539_v51, 2 }
 0xd6d   :  { %708 = vmatpush.msra.mxu3 %v681_v45 }
 0xd6e   :  { %542 = vrot.lane.b32.xlu2 %v541_v52, %s964_s2 }
 0xd6f   :  { %709 = vmatpush.msra.mxu3 %v680_v46 }
 0xdc8   :  { %v543_v53 = vpop.permute.xlu2 %542 }
 0xdc9   :  { %747 = vmatmul.msk.f32.vlgmr.msra.gmra.mxu1 %vm133_vm5, %v543_v53 }
 0xe46   :  { %v563_v54 = vpop.f32.mrf.mxu1 }
 0xe47   :  { %v567_v55 = vrot.slane %v563_v54, 4 }
 0xe49   :  { %v569_v56 = vadd.f32 %v567_v55, %v1088_v63 }
 0xe4b   :  { %812 = vtanh.f32 %v569_v56  ;;  %v748_v58 = vmul.f32 -1.442695, %v569_v56 }
 0xe4d   :  { %814 = vpow2.f32 %v748_v58 }
 0xe51   :  { %v813_v57 = vpop.eup %812 }
 0xe52   :  { %595 = vrot.lane.b32.xlu0 %v813_v57, %s963_s17 }
 0xe53   :  { %v815_v59 = vpop.eup %814 }
 0xe54   :  { %v573_v60 = vadd.f32 1.0, %v815_v59 }
 0xe56   :  { %816 = vrcp.f32 %v573_v60  ;;  %v585_v3 = vand.u32 2147483648, %v573_v60  ;;  %vm579_vm12 = vweird.f32 %v573_v60  ;;  %v583_v4 = vand.u32 2147483647, %v573_v60 }
 0xe58   :  { %v586_v6 = vor.u32 1.1754944e-38, %v585_v3  ;;  %vm584_vm14 = vcmp.eq.f32.partialorder %v583_v4, 8.507059e+37 }
 0xe5c   :  { %v817_v61 = vpop.eup %816 }
 0xe5d   :  { %v575_v62 = vmul.f32 %v817_v61, %v573_v60  ;;  %vm580_vm11 = vweird.f32 %v817_v61 }
 0xe5e   :  { %vm581_vm13 = vmor %vm579_vm12, %vm580_vm11 }
 0xe5f   :  { %v576_v0 = vsub.f32 1.0, %v575_v62 }
 0xe61   :  { %v577_v1 = vmul.f32 %v817_v61, %v576_v0 }
 0xe63   :  { %v578_v2 = vadd.f32 %v817_v61, %v577_v1 }
 0xe65   :  { %v582_v5 = vsel %vm581_vm13, %v817_v61, %v578_v2 }
 0xe66   :  { %v587_v8 = vsel %vm584_vm14, %v586_v6, %v582_v5 }
 0xe67   :  { %v593_v12 = vmul.f32 %v591_v10, %v587_v8 }
 0xec4   :  { %v596_v7 = vpop.permute.xlu0 %595 }
 0xec5   :  { %v598_v9 = vmul.f32 %v596_v7, %v587_v8 }
 0xec7   :  { %600 = vrot.lane.b32.xlu1 %v598_v9, %s964_s2 }
 0xf39   :  { %v601_v11 = vpop.permute.xlu1 %600 }
 0xf3a   :  { %v603_v13 = vadd.f32 %v601_v11, %v593_v12 }
 0xf3c   :  { %818 = vtanh.f32 %v603_v13  ;;  %v661_v38 = vrot.slane %v603_v13, 6 }
 0xf42   :  { %v819_v14 = vpop.eup %818 }
 0xf43   :  { %606 = vrot.lane.b32.xlu2 %v819_v14, %s963_s17 }
 0xf9d   :  { %v607_v16 = vpop.permute.xlu2 %606 }
 0xf9e   :  { %v609_v17 = vmul.f32 %v607_v16, %v587_v8 }
 0xfa0   :  { %v611_v18 = vrot.slane %v609_v17, 4 }
 0xfa2   :  { %612 = vrot.lane.b32.xlu0 %v611_v18, %s964_s2 }
0x1014   :  { %v613_v19 = vpop.permute.xlu0 %612 }
0x1015   :  { %749 = vmatmul.msk.f32.vlgmr.msra.gmra.mxu2 %vm133_vm5, %v613_v19 }
0x1098   :  { %v633_v20 = vpop.f32.mrf.mxu2 }
0x1099   :  { %v637_v21 = vrot.slane %v633_v20, 2 }
0x109b   :  { %v639_v22 = vadd.f32 %v637_v21, %v1088_v63 }
0x109d   :  { %820 = vtanh.f32 %v639_v22  ;;  %v750_v24 = vmul.f32 -1.442695, %v639_v22 }
0x109f   :  { %822 = vpow2.f32 %v750_v24 }
0x10a3   :  { %v821_v23 = vpop.eup %820 }
0x10a4   :  { %665 = vrot.lane.b32.xlu1 %v821_v23, %s963_s17 }
0x10a5   :  { %v823_v25 = vpop.eup %822 }
0x10a6   :  { %v643_v26 = vadd.f32 1.0, %v823_v25 }
0x10a8   :  { %824 = vrcp.f32 %v643_v26  ;;  %v655_v32 = vand.u32 2147483648, %v643_v26  ;;  %vm649_vm1 = vweird.f32 %v643_v26  ;;  %v653_v33 = vand.u32 2147483647, %v643_v26 }
0x10aa   :  { %v656_v34 = vor.u32 1.1754944e-38, %v655_v32  ;;  %vm654_vm0 = vcmp.eq.f32.partialorder %v653_v33, 8.507059e+37 }
0x10ae   :  { %v825_v27 = vpop.eup %824 }
0x10af   :  { %v645_v28 = vmul.f32 %v825_v27, %v643_v26  ;;  %vm650_vm15 = vweird.f32 %v825_v27 }
0x10b0   :  { %vm651_vm2 = vmor %vm649_vm1, %vm650_vm15 }
0x10b1   :  { %v646_v29 = vsub.f32 1.0, %v645_v28 }
0x10b3   :  { %v647_v30 = vmul.f32 %v825_v27, %v646_v29 }
0x10b5   :  { %v648_v31 = vadd.f32 %v825_v27, %v647_v30 }
0x10b7   :  { %v652_v63 = vsel %vm651_vm2, %v825_v27, %v648_v31 }
0x10b8   :  { %v657_v36 = vsel %vm654_vm0, %v656_v34, %v652_v63 }
0x10b9   :  { %v663_v39 = vmul.f32 %v661_v38, %v657_v36 }
0x1116   :  { %v666_v35 = vpop.permute.xlu1 %665 }
0x1117   :  { %v668_v37 = vmul.f32 %v666_v35, %v657_v36 }
0x1119   :  { %670 = vrot.lane.b32.xlu2 %v668_v37, %s964_s2 }
0x1173   :  { %v671_v40 = vpop.permute.xlu2 %670 }
0x1174   :  { %v673_v41 = vadd.f32 %v671_v40, %v663_v39 }
0x1176   :  { %826 = vtanh.f32 %v673_v41 }
0x117c   :  { %v827_v42 = vpop.eup %826 }
0x117d   :  { %676 = vrot.lane.b32.xlu0 %v827_v42, %s963_s17 }
0x11ef   :  { %v677_v47 = vpop.permute.xlu0 %676 }
0x11f0   :  { %v679_v15 = vmul.f32 %v677_v47, %v657_v36 }
0x11f2   :  { %v689_v48 = vrot.slane %v679_v15, 6 }
0x11f4   :  { %690 = vrot.lane.b32.xlu1 %v689_v48, %s964_s2 }
0x1266   :  { %v691_v49 = vpop.permute.xlu1 %690 }
0x1267   :  { %751 = vmatmul.msk.f32.vlgmr.msra.gmra.mxu3 %vm133_vm5, %v691_v49 }
0x12ea   :  { %v711_v51 = vpop.f32.mrf.mxu3 }
0x12eb   :  { %v712_v52 = vadd.f32 %v763_v50, %v711_v51 }
0x12ed   :  { %714 = vst [vmem:[#allocation10] sm:$0x3] %v712_v52 }
0x12ee   :  { %725 = dma.vmem_to_hbm [thread:$0]  %s721_s21, 32, %s723_s24, [#allocation4]  }
0x12ef   :  { %954 = dma.done.wait [#allocation4], 32  }
0x12f0   :  { %955 = vsyncadd [#allocation4], 4294967264 }
0x12f1   :  { %730 = vsyncpa [#allocation3], 1 }
0x12f2   :  { %731 = vsyncpa [#allocation6], 1 }
0x12f3   :  { %732 = vsyncpa [#allocation9], 1 }
0x12f4   :  { %733 = vsyncpa [#allocation4], 1 }

</bundles_post_ra>
